<compile_context>
chip_gen: v6e
topology: v6e:2x2x1
jax: 0.10.0
libtpu: 0.0.40
codegen_flags: <defaults>
</compile_context>

<pallas_src>
import jax
import jax.numpy as jnp
from jax import lax
from jax.experimental import pallas as pl
from jax.experimental.pallas import tpu as pltpu


def _round_up(x, m):
    return ((x + m - 1) // m) * m


def _vmem_limit(per_step_bytes):
    # Defaults (16 MiB scoped on v5e, 32 MiB on v6e/v7x) are too tight for
    # larger tiles; request what we need with headroom, bounded below 128 MiB.
    return int(min(112 * 2**20, max(32 * 2**20, 3 * per_step_bytes)))


# ---------------------------------------------------------------------------
# individual=True : one Linear(seq_len -> pred_len) per channel
# ---------------------------------------------------------------------------
def _individual_kernel(x_ref, w_ref, b_ref, o_ref):
    # x_ref: (TC, B, Lp) bf16   w_ref: (TC, Pp, Lp) bf16
    # b_ref: (TC, 1, Pp) f32    o_ref: (TC, B, Pp) f32
    # Batched matmul over the channel axis; contraction over L on the MXU,
    # consuming the PyTorch (P, L) weight layout directly (no transpose).
    y = lax.dot_general(
        x_ref[...], w_ref[...],
        dimension_numbers=(((2,), (2,)), ((0,), (0,))),
        preferred_element_type=jnp.float32,
    )                                              # (TC, B, Pp)
    o_ref[...] = y + b_ref[...]                    # (TC, 1, Pp) broadcasts over B


def channel_projection_individual(x, weights, biases, *, channels_per_step=16):
    """x: (B, L, C), weights: (C, P, L), biases: (C, P) -> (B, P, C)."""
    B, L, C = x.shape
    P = weights.shape[1]

    p_pad = _round_up(P, 128)      # lane-dense output stores
    l_pad = _round_up(L, 16)       # bf16 sublane packing

    tc = max(1, min(channels_per_step, C))
    if C > 1 and _round_up(C, tc) // tc == 1:
        tc = -(-C // 2)            # guarantee >= 2 grid steps (v7x has 2 TCs)
    c_pad = _round_up(C, tc)

    x_cbl = jnp.transpose(x, (2, 0, 1)).astype(jnp.bfloat16)       # (C, B, L)
    x_cbl = jnp.pad(x_cbl, ((0, c_pad - C), (0, 0), (0, l_pad - L)))
    w_p = jnp.pad(weights.astype(jnp.bfloat16),
                  ((0, c_pad - C), (0, p_pad - P), (0, l_pad - L)))
    b_p = jnp.pad(biases, ((0, c_pad - C), (0, p_pad - P))).reshape(c_pad, 1, p_pad)

    grid = (c_pad // tc,)
    step_bytes = 2 * (tc * (p_pad * l_pad + B * l_pad) * 2        # bf16 x + w (dbl buf)
                      + tc * B * p_pad * 4 + tc * p_pad * 4)      # f32 out + bias
    flops = 2 * c_pad * B * l_pad * p_pad
    bytes_accessed = (2 * c_pad * (B * l_pad + p_pad * l_pad)
                      + 4 * c_pad * (B * p_pad + p_pad))

    out_cbp = pl.pallas_call(
        _individual_kernel,
        out_shape=jax.ShapeDtypeStruct((c_pad, B, p_pad), jnp.float32),
        grid=grid,
        in_specs=[
            pl.BlockSpec((tc, B, l_pad), lambda c: (c, 0, 0)),
            pl.BlockSpec((tc, p_pad, l_pad), lambda c: (c, 0, 0)),
            pl.BlockSpec((tc, 1, p_pad), lambda c: (c, 0, 0)),
        ],
        out_specs=pl.BlockSpec((tc, B, p_pad), lambda c: (c, 0, 0)),
        compiler_params=pltpu.CompilerParams(
            dimension_semantics=("parallel",),
            vmem_limit_bytes=_vmem_limit(step_bytes)),
        cost_estimate=pl.CostEstimate(
            flops=flops, transcendentals=0, bytes_accessed=bytes_accessed),
    )(x_cbl, w_p, b_p)

    # TODO(synk): emit (B, C, P) directly when the consumer allows, to drop this
    # final HBM transpose pass on the memory-bound individual path.
    return jnp.transpose(out_cbp[:C, :, :P], (1, 2, 0))            # (B, P, C)


# ---------------------------------------------------------------------------
# individual=False : single shared Linear along the seq axis
# ---------------------------------------------------------------------------
def _shared_kernel_clast(x_ref, w_ref, b_ref, o_ref):
    # x_ref: (1, Lp, TCc) bf16  w_ref: (Pp, Lp) bf16  b_ref: (Pp, 1) f32
    # o_ref: (1, Pp, TCc) f32
    # y[p, c] = sum_l W[p, l] * x[l, c] -- C stays on the lane axis, output
    # block written lane-dense, no wrapper transposes needed.
    y = lax.dot_general(
        w_ref[...], x_ref[0],
        dimension_numbers=(((1,), (0,)), ((), ())),
        preferred_element_type=jnp.float32,
    )                                              # (Pp, TCc)
    o_ref[0] = y + b_ref[...]                      # (Pp, 1) broadcasts over C


def _shared_kernel_flat(x_ref, w_ref, b_ref, o_ref):
    # x_ref: (TM, Lp) bf16  w_ref: (Pp, Lp) bf16  b_ref: (1, Pp) f32
    # o_ref: (TM, Pp) f32
    y = lax.dot_general(
        x_ref[...], w_ref[...],
        dimension_numbers=(((1,), (1,)), ((), ())),
        preferred_element_type=jnp.float32,
    )                                              # (TM, Pp)
    o_ref[...] = y + b_ref[...]


def channel_projection_shared(x, weight, bias, *, channel_tile=512, row_tile=2048):
    """x: (B, L, C), weight: (P, L), bias: (P,) -> (B, P, C)."""
    B, L, C = x.shape
    P = weight.shape[0]

    p_pad = _round_up(P, 128)
    l_pad = _round_up(L, 16)
    w_p = jnp.pad(weight.astype(jnp.bfloat16), ((0, p_pad - P), (0, l_pad - L)))

    if C >= 32:
        # --- C on the lane axis: no wrapper transposes, lane-dense stores ---
        tcc = min(channel_tile, _round_up(C, 128))
        c_pad = _round_up(C, tcc)
        x_p = jnp.pad(x.astype(jnp.bfloat16),
                      ((0, 0), (0, l_pad - L), (0, c_pad - C)))
        b_p = jnp.pad(bias, (0, p_pad - P)).reshape(p_pad, 1)

        grid = (B, c_pad // tcc)
        step_bytes = (2 * (l_pad * tcc * 2 + p_pad * tcc * 4)      # x + out (dbl buf)
                      + 2 * (p_pad * l_pad * 2 + p_pad * 4))       # resident w + bias
        flops = 2 * B * c_pad * l_pad * p_pad
        bytes_accessed = (2 * (B * l_pad * c_pad + p_pad * l_pad)
                          + 4 * B * p_pad * c_pad)

        out = pl.pallas_call(
            _shared_kernel_clast,
            out_shape=jax.ShapeDtypeStruct((B, p_pad, c_pad), jnp.float32),
            grid=grid,
            in_specs=[
                pl.BlockSpec((1, l_pad, tcc), lambda b, c: (b, 0, c)),
                pl.BlockSpec((p_pad, l_pad), lambda b, c: (0, 0)),   # weight resident
                pl.BlockSpec((p_pad, 1), lambda b, c: (0, 0)),       # bias resident
            ],
            out_specs=pl.BlockSpec((1, p_pad, tcc), lambda b, c: (b, 0, c)),
            compiler_params=pltpu.CompilerParams(
                dimension_semantics=("parallel", "parallel"),
                vmem_limit_bytes=_vmem_limit(step_bytes)),
            cost_estimate=pl.CostEstimate(
                flops=flops, transcendentals=0, bytes_accessed=bytes_accessed),
        )(x_p, w_p, b_p)
        return out[:, :P, :C]

    # --- very small C: flattened (B*C, L) rows, weight resident ---
    M = B * C
    x_flat = jnp.transpose(x, (0, 2, 1)).reshape(M, L).astype(jnp.bfloat16)

    m_base = _round_up(M, 16)
    n_tiles = pl.cdiv(m_base, row_tile)
    if n_tiles == 1 and m_base >= 32:
        n_tiles = 2                                # keep both v7x TCs busy
    tm = _round_up(pl.cdiv(m_base, n_tiles), 16)
    m_pad = n_tiles * tm
    x_flat = jnp.pad(x_flat, ((0, m_pad - M), (0, l_pad - L)))
    b_p = jnp.pad(bias, (0, p_pad - P)).reshape(1, p_pad)

    step_bytes = (2 * (tm * l_pad * 2 + tm * p_pad * 4)
                  + 2 * (p_pad * l_pad * 2 + p_pad * 4))
    flops = 2 * m_pad * l_pad * p_pad
    bytes_accessed = 2 * (m_pad * l_pad + p_pad * l_pad) + 4 * m_pad * p_pad

    out = pl.pallas_call(
        _shared_kernel_flat,
        out_shape=jax.ShapeDtypeStruct((m_pad, p_pad), jnp.float32),
        grid=(n_tiles,),
        in_specs=[
            pl.BlockSpec((tm, l_pad), lambda i: (i, 0)),
            pl.BlockSpec((p_pad, l_pad), lambda i: (0, 0)),          # weight resident
            pl.BlockSpec((1, p_pad), lambda i: (0, 0)),              # bias resident
        ],
        out_specs=pl.BlockSpec((tm, p_pad), lambda i: (i, 0)),
        compiler_params=pltpu.CompilerParams(
            dimension_semantics=("parallel",),
            vmem_limit_bytes=_vmem_limit(step_bytes)),
        cost_estimate=pl.CostEstimate(
            flops=flops, transcendentals=0, bytes_accessed=bytes_accessed),
    )(x_flat, w_p, b_p)

    return jnp.transpose(out[:M, :P].reshape(B, C, P), (0, 2, 1))   # (B, P, C)


# ---------------------------------------------------------------------------
if __name__ == "__main__":
    # shapes implied by the forward: x = (batch, seq_len, num_channel)
    B, L, P = 2, 8, 12
    C_SMALL, C_MID, C_BIG = 4, 48, 128

    key = jax.random.PRNGKey(0)
    ks = jax.random.split(key, 7)

    x_s = jax.random.normal(ks[0], (B, L, C_SMALL), dtype=jnp.float32)
    x_m = jax.random.normal(ks[1], (B, L, C_MID), dtype=jnp.float32)
    x_b = jax.random.normal(ks[2], (B, L, C_BIG), dtype=jnp.float32)

    # PyTorch Linear layout: weight (P, L), bias (P,)
    w_ind = jax.random.normal(ks[3], (C_SMALL, P, L), dtype=jnp.float32) * 0.1
    b_ind = jax.random.normal(ks[4], (C_SMALL, P), dtype=jnp.float32) * 0.1
    w_shr = jax.random.normal(ks[5], (P, L), dtype=jnp.float32) * 0.1
    b_shr = jax.random.normal(ks[6], (P,), dtype=jnp.float32) * 0.1

    TOL = dict(atol=2e-2, rtol=2e-2)   # bf16 MXU operands, f32 accumulate

    # --- individual=True ---
    y_ind = jax.block_until_ready(channel_projection_individual(x_s, w_ind, b_ind))
    ref_ind = jnp.stack(
        [x_s[:, :, c] @ w_ind[c].T + b_ind[c] for c in range(C_SMALL)], axis=-1)
    assert y_ind.shape == (B, P, C_SMALL)
    assert jnp.allclose(y_ind, ref_ind, **TOL)

    def ref_shared(xx):
        return jnp.transpose(jnp.transpose(xx, (0, 2, 1)) @ w_shr.T + b_shr,
                             (0, 2, 1))

    # --- individual=False, tiny C -> flattened-row path ---
    y_s = jax.block_until_ready(channel_projection_shared(x_s, w_shr, b_shr))
    assert y_s.shape == (B, P, C_SMALL)
    assert jnp.allclose(y_s, ref_shared(x_s), **TOL)

    # --- individual=False, 32 <= C < 128 -> lane-padded transpose-free path ---
    y_m = jax.block_until_ready(channel_projection_shared(x_m, w_shr, b_shr))
    assert y_m.shape == (B, P, C_MID)
    assert jnp.allclose(y_m, ref_shared(x_m), **TOL)

    # --- individual=False, C >= 128 -> lane-dense transpose-free path ---
    y_b = jax.block_until_ready(channel_projection_shared(x_b, w_shr, b_shr))
    assert y_b.shape == (B, P, C_BIG)
    assert jnp.allclose(y_b, ref_shared(x_b), **TOL)

    print("KERNEL_OK")
</pallas_src>

<mosaic_0001>
module attributes {stable_mosaic.version = 11 : i64} {
  func.func @_individual_kernel(%arg0: i32, %arg1: memref<2x2x16xbf16, #tpu.memory_space<vmem>>, %arg2: memref<2x128x16xbf16, #tpu.memory_space<vmem>>, %arg3: memref<2x1x128xf32, #tpu.memory_space<vmem>>, %arg4: memref<2x2x128xf32, #tpu.memory_space<vmem>>) attributes {dimension_semantics = [#tpu.dimension_semantics<parallel>], iteration_bounds = array<i64: 2>, scalar_prefetch = 0 : i64, scratch_operands = 0 : i64, tpu.core_type = #tpu.core_type<tc>, window_params = [{transform_indices = @transform_0, window_bounds = array<i64: 2, 2, 16>}, {transform_indices = @transform_1, window_bounds = array<i64: 2, 128, 16>}, {transform_indices = @transform_2, window_bounds = array<i64: 2, 1, 128>}, {transform_indices = @transform_3, window_bounds = array<i64: 2, 2, 128>}]} {
    %c0 = arith.constant 0 : index
    %c0_0 = arith.constant 0 : index
    %c0_1 = arith.constant 0 : index
    %0 = vector.load %arg1[%c0, %c0_0, %c0_1] : memref<2x2x16xbf16, #tpu.memory_space<vmem>>, vector<2x2x16xbf16>
    %c0_2 = arith.constant 0 : index
    %c0_3 = arith.constant 0 : index
    %c0_4 = arith.constant 0 : index
    %1 = vector.load %arg2[%c0_2, %c0_3, %c0_4] : memref<2x128x16xbf16, #tpu.memory_space<vmem>>, vector<2x128x16xbf16>
    %cst = arith.constant dense<0.000000e+00> : vector<2x2x128xf32>
    %2 = tpu.matmul %0, %1, %cst {dimension_numbers = #tpu.dot_dimension_numbers<[2], [2], [1], [1], [0, 0, 0, 1, 1, 1], [0], [0]>} : vector<2x2x16xbf16>, vector<2x128x16xbf16>, vector<2x2x128xf32> -> vector<2x2x128xf32>
    %c0_5 = arith.constant 0 : index
    %c0_6 = arith.constant 0 : index
    %c0_7 = arith.constant 0 : index
    %3 = vector.load %arg3[%c0_5, %c0_6, %c0_7] : memref<2x1x128xf32, #tpu.memory_space<vmem>>, vector<2x1x128xf32>
    %4 = vector.broadcast %3 : vector<2x1x128xf32> to vector<2x2x128xf32>
    %5 = arith.addf %2, %4 : vector<2x2x128xf32>
    %c0_8 = arith.constant 0 : index
    %c0_9 = arith.constant 0 : index
    %c0_10 = arith.constant 0 : index
    %6 = vector.load %arg4[%c0_8, %c0_9, %c0_10] : memref<2x2x128xf32, #tpu.memory_space<vmem>>, vector<2x2x128xf32>
    tpu.vector_store %arg4[%c0_8, %c0_9, %c0_10], %5 {strides = array<i32>} : memref<2x2x128xf32, #tpu.memory_space<vmem>>, vector<2x2x128xf32>,
    return
  }
  func.func @transform_0(%arg0: i32) -> (i32, i32, i32) {
    %c0_i32 = arith.constant 0 : i32
    %c0_i32_0 = arith.constant 0 : i32
    %c0_i32_1 = arith.constant 0 : i32
    return %arg0, %c0_i32, %c0_i32_0 : i32, i32, i32
  }
  func.func @transform_1(%arg0: i32) -> (i32, i32, i32) {
    %c0_i32 = arith.constant 0 : i32
    %c0_i32_0 = arith.constant 0 : i32
    %c0_i32_1 = arith.constant 0 : i32
    return %arg0, %c0_i32, %c0_i32_0 : i32, i32, i32
  }
  func.func @transform_2(%arg0: i32) -> (i32, i32, i32) {
    %c0_i32 = arith.constant 0 : i32
    %c0_i32_0 = arith.constant 0 : i32
    %c0_i32_1 = arith.constant 0 : i32
    return %arg0, %c0_i32, %c0_i32_0 : i32, i32, i32
  }
  func.func @transform_3(%arg0: i32) -> (i32, i32, i32) {
    %c0_i32 = arith.constant 0 : i32
    %c0_i32_0 = arith.constant 0 : i32
    %c0_i32_1 = arith.constant 0 : i32
    return %arg0, %c0_i32, %c0_i32_0 : i32, i32, i32
  }
}

</mosaic_0001>

<bundles_post_ra>
// kernel: tpu_custom_call.1
= control target key start
LH: loop header
LB: loop body
LE: loop exit
PB: predicated region body
PF: predicated region fallthrough
CT: control target
= control target key end

     0   :  { %8 = vsyncpa [#allocation3], 0  ;;  %s980_s0 = inlined_call_operand.vmem [shape: bf16[4,2,16], index: 0, kind: input, shape index: {}]   ;;  %s981_s1 = inlined_call_operand.vmem [shape: bf16[4,128,16], index: 1, kind: input, shape index: {}]   ;;  %s982_s2 = inlined_call_operand.vmem [shape: f32[4,1,128], index: 2, kind: input, shape index: {}]   ;;  %s983_s3 = inlined_call_operand.hbm [shape: f32[4,2,128], index: 3, kind: output, shape index: {}]  }
   0x1   :  { %10 = vsyncpa [#allocation3 + $0x1], 0  ;;  %s814_s12 = smov 0   ;;  %s816_s13 = smov 0  }
   0x2   :  { %s818_s14 = smov 0   ;;  %s820_s15 = smov 0  }
   0x3 LB: > { %s835_s16 = sadd.s32 4294967295, %s787_s15   ;;  %s573_s17 = sadd.s32 4294967294, %s787_s15   ;;  %s787_s15 = sphi %s820_s15, %s989_s15   ;;  %s783_s14 = sphi %s818_s14, %s988_s14   ;;  %s779_s13 = sphi %s816_s13, %s987_s13   ;;  %s775_s12 = sphi %s814_s12, %s986_s12  }
   0x4   : > { %s839_s18 = sadd.s32 1, %s787_s15   ;;  %s101_s19 = sadd.s32 1, %s783_s14 }
   0x5   : > { %s98_s20 = ssub.s32 %s787_s15, %s839_s18  ;;  %p111_p0 = scmp.ne.s32.totalorder %s783_s14, %s779_s13 }
   0x6   : > { %p99_p1 = scmp.eq.s32.totalorder %s98_s20, 0  ;;  %p112_p2 = scmp.eq.s32.totalorder %s835_s16, 1 }
   0x7   : > { %p117_p3 = scmp.ne.s32.totalorder %s779_s13, %s775_s12  ;;  %p118_p4 = scmp.eq.s32.totalorder %s573_s17, 1 }
   0x8   : > { %s850_s21 = scalar_select %p99_p1, %s783_s14, %s101_s19  }
   0x9   : > { %p852_p5 = por %p112_p2, %p111_p0  ;;  %p856_p6 = por %p118_p4, %p117_p3 }
   0xa   : > { %p576_p7 = scmp.ge.s32.totalorder %s787_s15, 1  ;;  %p162_p8 = scmp.lt.s32.totalorder %s787_s15, 3 }
   0xc   : > { %p163_p9 = pnand %p576_p7, %p162_p8 }
   0xd   : > { %s578_s24 = sshll.u32 (!%p163_p9), %s835_s16, 1  ;;  %s192_s5 = sand.u32 (!%p163_p9), 1, %s779_s13  }
   0xe   : > { %166 = sbr.rel (%p163_p9) target bundleno = 298 (0x12a), region = 32  ;;  %p196_p10 = scmp.lt.s32.totalorder (!%p163_p9), %s578_s24, 3 }
   0xf   : > { %s577_s6 = sshll.u32 (!%p163_p9), %s192_s5, 2  ;;  %s609_s17 = sshll.u32 (!%p163_p9), %s835_s16, 6 }
  0x10   : > { %s194_s10 = scalar_lea.vmem (!%p163_p9), [#allocation2], %s577_s6  ;;  %s940_s16 = scalar_lea.sflag (!%p163_p9), [#allocation3], %s192_s5 }
  0x11   : > { %s493_s11 = sshll.u32 (!%p163_p9), %s194_s10, 4  ;;  %s791_s26 = smov (!%p163_p9), [#allocation2]   ;;  %s933_s11 = int_to_ptr.vmem [resolvable:$true] %s493_s11 }
  0x12   : > { %s731_s27 = sshll.u32 (!%p163_p9), %s791_s26, 4  ;;  %s732_s27 = int_to_ptr.vmem [resolvable:$false] %s731_s27 }
  0x13   : > { %v789_v0 = vmov 0.0   ;;  %vm790_vm0 = vmmov 0   ;;  %s991_s24 = smov (!%p196_p10, %s578_s24), 3  ;;  %vm302_vm1 = vcmask 130048   ;;  %p734_p0 = scmp.lt.s32.totalorder %s933_s11, %s732_s27 }
  0x14   : > { %628 = vmatprep.subr.bf16.mxu0 %v789_v0  ;;  %648 = vmatprep.subr.bf16.mxu1 %v789_v0  ;;  %s608_s25 = sshll.u32 %s991_s24, 6  ;;  %s198_s4 = scalar_lea.vmem %s980_s0, %s991_s24 }
  0x15   : > { %644 = vmatprep.mubr.msk.bf16.mxu0 %vm790_vm0, %v789_v0  ;;  %664 = vmatprep.mubr.msk.bf16.mxu1 %vm790_vm0, %v789_v0  ;;  %s873_s28 = scalar_lea.vmem %s981_s1, %s608_s25  ;;  %v214_v33 = vld [vmem:[%s198_s4] sm:$0x1]  ;;  %v215_v34 = vld [vmem:[%s198_s4 + $0x1] sm:$0x1]  ;;  %s210_s9 = scalar_lea.vmem %s982_s2, %s991_s24 }
  0x16   : > { %v711_v1 = vld [vmem:[%s873_s28 + $0x38] sm:$0xff]   ;;  %v713_v5 = vld [vmem:[%s873_s28 + $0x30] sm:$0xff]   ;;  %v715_v9 = vld [vmem:[%s873_s28 + $0x28] sm:$0xff]   ;;  %s938_s25 = scalar_lea.hbm %s983_s3, %s609_s17  ;;  %s727_s24 = scalar_lea.vmem %s933_s11, 64 }
  0x17   : > { %v712_v2 = vld [vmem:[%s873_s28 + $0x78] sm:$0xff]   ;;  %v328_v3 = vsel %vm302_vm1, %v711_v1, 0  ;;  %v714_v6 = vld [vmem:[%s873_s28 + $0x70] sm:$0xff]   ;;  %v325_v7 = vsel %vm302_vm1, %v713_v5, 0  ;;  %v716_v10 = vld [vmem:[%s873_s28 + $0x68] sm:$0xff]   ;;  %v322_v11 = vsel %vm302_vm1, %v715_v9, 0  ;;  %p728_p11 = scmp.ne.s32.totalorder %s933_s11, %s727_s24 }
  0x18   : > { %629 = vmatpush3.bf16.xpose.msra.mxu0 %v328_v3  ;;  %v435_v4 = vsel %vm302_vm1, %v712_v2, 0  ;;  %v432_v8 = vsel %vm302_vm1, %v714_v6, 0  ;;  %v429_v12 = vsel %vm302_vm1, %v716_v10, 0  ;;  %v717_v13 = vld [vmem:[%s873_s28 + $0x20] sm:$0xff]   ;;  %v719_v17 = vld [vmem:[%s873_s28 + $0x18] sm:$0xff]   ;;  %v721_v21 = vld [vmem:[%s873_s28 + $0x10] sm:$0xff]  }
  0x19   : > { %649 = vmatpush3.bf16.xpose.msra.mxu1 %v435_v4  ;;  %630 = vmatprep.subr.bf16.mxu0 %v789_v0  ;;  %v718_v14 = vld [vmem:[%s873_s28 + $0x60] sm:$0xff]   ;;  %v319_v15 = vsel %vm302_vm1, %v717_v13, 0  ;;  %v720_v18 = vld [vmem:[%s873_s28 + $0x58] sm:$0xff]   ;;  %v316_v19 = vsel %vm302_vm1, %v719_v17, 0  ;;  %v722_v22 = vld [vmem:[%s873_s28 + $0x50] sm:$0xff]   ;;  %v313_v23 = vsel %vm302_vm1, %v721_v21, 0  ;;  %p729_p12 = pnand %p728_p11, %p852_p5 }
  0x1a   : > { %650 = vmatprep.subr.bf16.mxu1 %v789_v0  ;;  %v426_v16 = vsel %vm302_vm1, %v718_v14, 0  ;;  %v423_v20 = vsel %vm302_vm1, %v720_v18, 0  ;;  %v420_v24 = vsel %vm302_vm1, %v722_v22, 0  ;;  %v723_v25 = vld [vmem:[%s873_s28 + $0x8] sm:$0xff]   ;;  %v725_v29 = vld [vmem:[%s873_s28] sm:$0xff]  }
  0x1b   : > { %v724_v26 = vld [vmem:[%s873_s28 + $0x48] sm:$0xff]   ;;  %v310_v27 = vsel %vm302_vm1, %v723_v25, 0  ;;  %v726_v30 = vld [vmem:[%s873_s28 + $0x40] sm:$0xff]   ;;  %v307_v31 = vsel %vm302_vm1, %v725_v29, 0  ;;  %p730_p13 = pneg %p729_p12  ;;  %s733_s28 = scalar_lea.vmem %s732_s27, 128 }
  0x1c   : > { %v417_v28 = vsel %vm302_vm1, %v724_v26, 0  ;;  %v414_v32 = vsel %vm302_vm1, %v726_v30, 0  ;;  %v583_v35 = vld [vmem:[%s210_s9] ss:$0 sm:$0xff]  ;;  %v584_v36 = vld [vmem:[%s210_s9 + $0x1] ss:$0 sm:$0xff]  ;;  %p735_p1 = scmp.lt.s32.totalorder %s733_s28, %s727_s24 }
  0x1e   : > { %p736_p2 = por %p735_p1, %p734_p0 }
  0x20   : > { %631 = vmatpush3.bf16.xpose.msra.mxu0 %v325_v7  ;;  %p737_p3 = pnand %p736_p2, %p730_p13 }
  0x21   : > { %651 = vmatpush3.bf16.xpose.msra.mxu1 %v432_v8  ;;  %632 = vmatprep.subr.bf16.mxu0 %v789_v0 }
  0x22   : > { %652 = vmatprep.subr.bf16.mxu1 %v789_v0 }
  0x28   : > { %633 = vmatpush3.bf16.xpose.msra.mxu0 %v322_v11 }
  0x29   : > { %653 = vmatpush3.bf16.xpose.msra.mxu1 %v429_v12  ;;  %634 = vmatprep.subr.bf16.mxu0 %v789_v0 }
  0x2a   : > { %654 = vmatprep.subr.bf16.mxu1 %v789_v0 }
  0x30   : > { %635 = vmatpush3.bf16.xpose.msra.mxu0 %v319_v15 }
  0x31   : > { %655 = vmatpush3.bf16.xpose.msra.mxu1 %v426_v16  ;;  %636 = vmatprep.subr.bf16.mxu0 %v789_v0 }
  0x32   : > { %656 = vmatprep.subr.bf16.mxu1 %v789_v0 }
  0x38   : > { %637 = vmatpush3.bf16.xpose.msra.mxu0 %v316_v19 }
  0x39   : > { %657 = vmatpush3.bf16.xpose.msra.mxu1 %v423_v20  ;;  %638 = vmatprep.subr.bf16.mxu0 %v789_v0 }
  0x3a   : > { %658 = vmatprep.subr.bf16.mxu1 %v789_v0 }
  0x40   : > { %639 = vmatpush3.bf16.xpose.msra.mxu0 %v313_v23 }
  0x41   : > { %659 = vmatpush3.bf16.xpose.msra.mxu1 %v420_v24  ;;  %640 = vmatprep.subr.bf16.mxu0 %v789_v0 }
  0x42   : > { %660 = vmatprep.subr.bf16.mxu1 %v789_v0 }
  0x48   : > { %641 = vmatpush3.bf16.xpose.msra.mxu0 %v310_v27 }
  0x49   : > { %661 = vmatpush3.bf16.xpose.msra.mxu1 %v417_v28  ;;  %642 = vmatprep.subr.bf16.mxu0 %v789_v0 }
  0x4a   : > { %662 = vmatprep.subr.bf16.mxu1 %v789_v0 }
  0x50   : > { %643 = vmatpush3.bf16.xpose.msra.mxu0 %v307_v31 }
  0x51   : > { %663 = vmatpush3.bf16.xpose.msra.mxu1 %v414_v32 }
  0x57   : > { %645 = vmatmul.mubr.msk.bf16.vlgmr.msra.gmra.mxu0 %vm302_vm1, %v214_v33 }
  0x58   : > { %665 = vmatmul.mubr.msk.bf16.vlgmr.msra.gmra.mxu1 %vm302_vm1, %v215_v34 }
 0x117   : > { %v364_v37 = vpop.f32.mrf.mxu0 }
 0x118   : > { %v365_v38 = vadd.f32 %v583_v35, %v364_v37  ;;  %v471_v39 = vpop.f32.mrf.mxu1 }
 0x119   : > { %v472_v40 = vadd.f32 %v584_v36, %v471_v39  ;;  %v646_v41 = vpop.f32.mrf.mxu0 }
 0x11a   : > { %477 = vst [vmem:[%s194_s10] sm:$0x3] %v365_v38  ;;  %v666_v42 = vpop.f32.mrf.mxu1 }
 0x11b   : > { %478 = vst [vmem:[%s194_s10 + $0x2] sm:$0x3] %v472_v40  ;;  %v367_v43 = vpop.f32.mrf.mxu0 }
 0x11c   : > { %v474_v44 = vpop.f32.mrf.mxu1 }
 0x11d   : > { %740 = shalt.err (!%p737_p3)
}
 0x11e   : > { %s741_s29 = scalar_lea.hbm %s938_s25, 64  ;;  %s745_s5 = scalar_lea.hbm %s983_s3, 128 }
 0x11f   : > { %p742_p4 = scmp.ne.s32.totalorder %s938_s25, %s741_s29  ;;  %p746_p9 = scmp.lt.s32.totalorder %s938_s25, %s983_s3 }
 0x120   : > { %p747_p10 = scmp.lt.s32.totalorder %s745_s5, %s741_s29 }
 0x121   : > { %p743_p7 = pnand %p742_p4, %p852_p5 }
 0x122   : > { %p748_p11 = por %p747_p10, %p746_p9 }
 0x123   : > { %p744_p8 = pneg %p743_p7 }
 0x125   : > { %p749_p12 = pnand %p748_p11, %p744_p8 }
 0x127   : > { %752 = shalt.err (!%p749_p12)
}
 0x128   : > { %s792_s8 = smov 32   ;;  %s793_s9 = smov 2   ;;  %v647_v45 = vpop.f32.mrf.mxu0  ;;  %v667_v46 = vpop.f32.mrf.mxu1 }
 0x129   : > { %668 = dma.vmem_to_hbm [thread:$0]  (%p852_p5), %s933_s11, 64, %s938_s25, %s940_s16, %s792_s8, %s792_s8, %s793_s9  }
 0x12a PF: > { %p674_p13 = scmp.ge.s32.totalorder %s787_s15, 2  ;;  %s508_s10 = sand.u32 1, %s775_s12  }
 0x12b   : > { %s509_s17 = scalar_lea.sflag [#allocation3], %s508_s10 }
 0x12c   : > { %p671_p0 = pnand %p674_p13, %p856_p6 }
 0x12e   : > { %p672_p1 = pneg %p671_p0 }
 0x130   : > { %770 = dma.done.wait (%p672_p1), %s509_s17, 64  }
 0x131   : > { %772 = vsyncadd (%p672_p1), %s509_s17, 4294967232  ;;  %p13_p5 = scmp.ge.s32.totalorder %s839_s18, 4   ;;  %s986_s12 = smov %s779_s13 }
 0x132   : > { %s987_s13 = smov %s783_s14  ;;  %s988_s14 = smov %s850_s21 }
 0x133   : > { %s989_s15 = smov %s839_s18  ;;  %15 = sbr.rel (!%p13_p5) target bundleno = 3 (0x3), region = 73 }
 0x138   :  { %514 = vsyncpa [#allocation3], 1 }
 0x139   :  { %516 = vsyncpa [#allocation3 + $0x1], 1 }

</bundles_post_ra>
